<compile_context>
chip_gen: v5e
topology: v5e:2x2
jax: 0.10.0
libtpu: 0.0.40
codegen_flags: <defaults>
</compile_context>

<pallas_src>
import jax
import jax.numpy as jnp
from jax.experimental import pallas as pl
from jax.experimental.pallas import tpu as pltpu


def lstm_kernel(x_ref, hc0_ref, w_ref, b_ref, wfc_ref, out_ref, xp_sc):
    # x_ref:   (S*B, D)     bf16, flattened sequence
    # hc0_ref: (B, 2H)      f32, [h0 | c0]
    # w_ref:   (D+H, 4H)    bf16, rows = [W_ih^T ; W_hh^T], gate order [i,f,o,g]
    # b_ref:   (1, 4H)      f32, b_ih + b_hh (same gate order)
    # wfc_ref: (H+1, C)     f32, rows = [W_fc^T ; b_fc]
    # out_ref: (B, 2H+C)    packed [tanh(h) | tanh(c) | fc4(tanh(h))]
    # xp_sc:   (S*B, 4H)    f32 scratch for the hoisted input projection
    B = hc0_ref.shape[0]
    H = hc0_ref.shape[1] // 2
    D = x_ref.shape[1]
    S = x_ref.shape[0] // B

    # ---- Hoisted input projection: one MXU matmul covering every time step ---
    xp_sc[...] = (jnp.dot(x_ref[...], w_ref[:D, :],
                          preferred_element_type=jnp.float32)
                  + b_ref[...])                                # (S*B, 4H) f32

    # Recurrent weights loaded once (bf16), reused every step.
    whh = w_ref[D:D + H, :]                                    # (H, 4H) bf16
    h0 = hc0_ref[:, :H]                                        # (B, H) f32
    c0 = hc0_ref[:, H:]                                        # (B, H) f32

    # ---- Serial LSTM recurrence: only h @ W_hh^T is on the critical path -----
    def step(t, carry):
        h_prev, c_prev = carry
        start = pl.multiple_of(t * B, B)
        gates = xp_sc[pl.ds(start, B), :] + jnp.dot(
            h_prev.astype(jnp.bfloat16), whh,
            preferred_element_type=jnp.float32)                # (B, 4H) f32

        # Gate order (after host-side permutation): [i, f, o, g]
        sig = jax.nn.sigmoid(gates[:, :3 * H])                 # one EUP pass
        g_g = jnp.tanh(gates[:, 3 * H:])                       # one EUP pass
        i_g = sig[:, 0 * H:1 * H]
        f_g = sig[:, 1 * H:2 * H]
        o_g = sig[:, 2 * H:3 * H]

        c_new = f_g * c_prev + i_g * g_g
        h_new = o_g * jnp.tanh(c_new)
        return (h_new, c_new)

    h, c = jax.lax.fori_loop(0, S, step, (h0, c0), unroll=True)

    # ---- Final tanh on (h, c) as in the module, then fc4 on tanh(h) ----------
    h_fin = jnp.tanh(h)
    c_fin = jnp.tanh(c)
    out_val = (jnp.dot(h_fin, wfc_ref[:H, :],
                       preferred_element_type=jnp.float32)
               + wfc_ref[H:, :])                               # (B, C)

    out_ref[...] = jnp.concatenate([h_fin, c_fin, out_val],
                                   axis=-1).astype(out_ref.dtype)


def base_lstm_forward(x, h0, c0, params):
    S, B, D = x.shape
    H = h0.shape[-1]
    C = params["w_fc"].shape[0]

    # Permute gate blocks from PyTorch's [i, f, g, o] to [i, f, o, g] so the
    # kernel can apply sigmoid / tanh over contiguous lane ranges.
    perm = jnp.concatenate([jnp.arange(0, 2 * H),
                            jnp.arange(3 * H, 4 * H),
                            jnp.arange(2 * H, 3 * H)])
    wih_t = params["w_ih"][perm].T                             # (D, 4H)
    whh_t = params["w_hh"][perm].T                             # (H, 4H)
    b = (params["b_ih"] + params["b_hh"])[perm][None]          # (1, 4H)

    # Pack weights into slabs: fewer, wider DMAs.
    w_slab = jnp.concatenate([wih_t, whh_t], axis=0).astype(jnp.bfloat16)
    fc_slab = jnp.concatenate([params["w_fc"].T,
                               params["b_fc"][None]], axis=0)  # (H+1, C) f32
    x2 = x.reshape(S * B, D).astype(jnp.bfloat16)              # (S*B, D) bf16
    hc0 = jnp.concatenate([h0[0], c0[0]], axis=-1)             # (B, 2H) f32
    b = b.astype(jnp.float32)

    vmem = pl.BlockSpec(memory_space=pltpu.MemorySpace.VMEM)

    packed = pl.pallas_call(
        lstm_kernel,
        out_shape=jax.ShapeDtypeStruct((B, 2 * H + C), x.dtype),
        in_specs=[vmem] * 5,
        out_specs=vmem,
        scratch_shapes=[pltpu.VMEM((S * B, 4 * H), jnp.float32)],
    )(x2, hc0, w_slab, b, fc_slab)

    hN = packed[:, :H][None]                                   # (1, B, H)
    cN = packed[:, H:2 * H][None]                              # (1, B, H)
    out = packed[:, 2 * H:][None]                              # (1, B, C)
    return out, (hN, cN)


def ref_forward(x, h0, c0, p):
    """Pure-JAX f32 reference matching PyTorch nn.LSTM + tanh + Linear."""
    def step(carry, xt):
        h, c = carry
        gates = xt @ p["w_ih"].T + p["b_ih"] + h @ p["w_hh"].T + p["b_hh"]
        i, f, g, o = jnp.split(gates, 4, axis=-1)
        i = jax.nn.sigmoid(i)
        f = jax.nn.sigmoid(f)
        g = jnp.tanh(g)
        o = jax.nn.sigmoid(o)
        c = f * c + i * g
        h = o * jnp.tanh(c)
        return (h, c), None

    (h, c), _ = jax.lax.scan(step, (h0[0], c0[0]), x)
    h = jnp.tanh(h)
    c = jnp.tanh(c)
    out = h @ p["w_fc"].T + p["b_fc"]
    return out[None], (h[None], c[None])


if __name__ == "__main__":
    # Module hyperparameters (small, consistent with the forward pass).
    input_dim = 8
    hidden_dim = 32
    num_output_cols = 4
    window_size = 8        # seq_len
    batch = 2

    key = jax.random.PRNGKey(0)
    ks = jax.random.split(key, 9)
    scale = 1.0 / jnp.sqrt(hidden_dim)

    params = {
        "w_ih": jax.random.uniform(ks[0], (4 * hidden_dim, input_dim), jnp.float32, -scale, scale),
        "w_hh": jax.random.uniform(ks[1], (4 * hidden_dim, hidden_dim), jnp.float32, -scale, scale),
        "b_ih": jax.random.uniform(ks[2], (4 * hidden_dim,), jnp.float32, -scale, scale),
        "b_hh": jax.random.uniform(ks[3], (4 * hidden_dim,), jnp.float32, -scale, scale),
        "w_fc": jax.random.uniform(ks[4], (num_output_cols, hidden_dim), jnp.float32, -scale, scale),
        "b_fc": jax.random.uniform(ks[5], (num_output_cols,), jnp.float32, -scale, scale),
    }

    x = jax.random.normal(ks[6], (window_size, batch, input_dim), jnp.float32)
    h0 = jax.random.normal(ks[7], (1, batch, hidden_dim), jnp.float32)
    c0 = jax.random.normal(ks[8], (1, batch, hidden_dim), jnp.float32)

    out, (hN, cN) = base_lstm_forward(x, h0, c0, params)
    jax.block_until_ready((out, hN, cN))

    out_r, (hN_r, cN_r) = ref_forward(x, h0, c0, params)
    # Tolerance relaxed for bf16 MXU operands (f32 accumulation / gate math).
    assert jnp.allclose(out, out_r, atol=2e-2, rtol=2e-2)
    assert jnp.allclose(hN, hN_r, atol=2e-2, rtol=2e-2)
    assert jnp.allclose(cN, cN_r, atol=2e-2, rtol=2e-2)

    print("KERNEL_OK")
</pallas_src>

<mosaic_0001>
module attributes {stable_mosaic.version = 11 : i64} {
  func.func @lstm_kernel(%arg0: memref<16x8xbf16, #tpu.memory_space<vmem>>, %arg1: memref<2x64xf32, #tpu.memory_space<vmem>>, %arg2: memref<40x128xbf16, #tpu.memory_space<vmem>>, %arg3: memref<1x128xf32, #tpu.memory_space<vmem>>, %arg4: memref<33x4xf32, #tpu.memory_space<vmem>>, %arg5: memref<2x68xf32, #tpu.memory_space<vmem>>, %arg6: memref<16x128xf32, #tpu.memory_space<vmem>>) attributes {dimension_semantics = [], scalar_prefetch = 0 : i64, scratch_operands = 1 : i64, tpu.core_type = #tpu.core_type<tc>} {
    %c0 = arith.constant 0 : index
    %c0_0 = arith.constant 0 : index
    %0 = vector.load %arg0[%c0, %c0_0] : memref<16x8xbf16, #tpu.memory_space<vmem>>, vector<16x8xbf16>
    %c0_1 = arith.constant 0 : index
    %c0_2 = arith.constant 0 : index
    %1 = vector.load %arg2[%c0_1, %c0_2] : memref<40x128xbf16, #tpu.memory_space<vmem>>, vector<8x128xbf16>
    %cst = arith.constant dense<0.000000e+00> : vector<16x128xf32>
    %2 = tpu.matmul %0, %1, %cst {dimension_numbers = #tpu.dot_dimension_numbers<[1], [0], [0], [1], [0, 0, 1, 1], [], []>} : vector<16x8xbf16>, vector<8x128xbf16>, vector<16x128xf32> -> vector<16x128xf32>
    %c0_3 = arith.constant 0 : index
    %c0_4 = arith.constant 0 : index
    %3 = vector.load %arg3[%c0_3, %c0_4] : memref<1x128xf32, #tpu.memory_space<vmem>>, vector<1x128xf32>
    %4 = vector.broadcast %3 : vector<1x128xf32> to vector<16x128xf32>
    %5 = arith.addf %2, %4 : vector<16x128xf32>
    %c0_5 = arith.constant 0 : index
    %c0_6 = arith.constant 0 : index
    %6 = vector.load %arg6[%c0_5, %c0_6] : memref<16x128xf32, #tpu.memory_space<vmem>>, vector<16x128xf32>
    tpu.vector_store %arg6[%c0_5, %c0_6], %5 {strides = array<i32>} : memref<16x128xf32, #tpu.memory_space<vmem>>, vector<16x128xf32>,
    %c8 = arith.constant 8 : index
    %c0_7 = arith.constant 0 : index
    %7 = vector.load %arg2[%c8, %c0_7] : memref<40x128xbf16, #tpu.memory_space<vmem>>, vector<32x128xbf16>
    %c0_8 = arith.constant 0 : index
    %c0_9 = arith.constant 0 : index
    %8 = vector.load %arg1[%c0_8, %c0_9] : memref<2x64xf32, #tpu.memory_space<vmem>>, vector<2x32xf32>
    %c0_10 = arith.constant 0 : index
    %c32 = arith.constant 32 : index
    %9 = vector.load %arg1[%c0_10, %c32] : memref<2x64xf32, #tpu.memory_space<vmem>>, vector<2x32xf32>
    %c0_i32 = arith.constant 0 : i32
    %c2_i32 = arith.constant 2 : i32
    %10 = arith.muli %c0_i32, %c2_i32 : i32
    %11 = tpu.assume_multiple %10, 2 : i32
    %12 = arith.index_cast %11 : i32 to index
    %c0_11 = arith.constant 0 : index
    %13 = vector.load %arg6[%12, %c0_11] : memref<16x128xf32, #tpu.memory_space<vmem>>, vector<2x128xf32>
    %14 = arith.truncf %8 : vector<2x32xf32> to vector<2x32xbf16>
    %cst_12 = arith.constant dense<0.000000e+00> : vector<2x128xf32>
    %15 = tpu.matmul %14, %7, %cst_12 {dimension_numbers = #tpu.dot_dimension_numbers<[1], [0], [0], [1], [0, 0, 1, 1], [], []>} : vector<2x32xbf16>, vector<32x128xbf16>, vector<2x128xf32> -> vector<2x128xf32>
    %16 = arith.addf %13, %15 : vector<2x128xf32>
    %17 = vector.extract_strided_slice %16 {offsets = [0, 0], sizes = [2, 96], strides = [1, 1]} : vector<2x128xf32> to vector<2x96xf32>
    %18 = arith.negf %17 : vector<2x96xf32>
    %19 = math.exp %18 : vector<2x96xf32>
    %cst_13 = arith.constant 1.000000e+00 : f32
    %20 = vector.broadcast %cst_13 : f32 to vector<2x96xf32>
    %21 = arith.addf %20, %19 : vector<2x96xf32>
    %22 = arith.divf %20, %21 : vector<2x96xf32>
    %23 = vector.extract_strided_slice %16 {offsets = [0, 96], sizes = [2, 32], strides = [1, 1]} : vector<2x128xf32> to vector<2x32xf32>
    %24 = math.tanh %23 : vector<2x32xf32>
    %25 = vector.extract_strided_slice %22 {offsets = [0, 0], sizes = [2, 32], strides = [1, 1]} : vector<2x96xf32> to vector<2x32xf32>
    %26 = vector.extract_strided_slice %22 {offsets = [0, 32], sizes = [2, 32], strides = [1, 1]} : vector<2x96xf32> to vector<2x32xf32>
    %27 = vector.extract_strided_slice %22 {offsets = [0, 64], sizes = [2, 32], strides = [1, 1]} : vector<2x96xf32> to vector<2x32xf32>
    %28 = arith.mulf %26, %9 : vector<2x32xf32>
    %29 = arith.mulf %25, %24 : vector<2x32xf32>
    %30 = arith.addf %28, %29 : vector<2x32xf32>
    %31 = math.tanh %30 : vector<2x32xf32>
    %32 = arith.mulf %27, %31 : vector<2x32xf32>
    %c1_i32 = arith.constant 1 : i32
    %c2_i32_14 = arith.constant 2 : i32
    %33 = arith.muli %c1_i32, %c2_i32_14 : i32
    %34 = tpu.assume_multiple %33, 2 : i32
    %35 = arith.index_cast %34 : i32 to index
    %c0_15 = arith.constant 0 : index
    %36 = vector.load %arg6[%35, %c0_15] : memref<16x128xf32, #tpu.memory_space<vmem>>, vector<2x128xf32>
    %37 = arith.truncf %32 : vector<2x32xf32> to vector<2x32xbf16>
    %cst_16 = arith.constant dense<0.000000e+00> : vector<2x128xf32>
    %38 = tpu.matmul %37, %7, %cst_16 {dimension_numbers = #tpu.dot_dimension_numbers<[1], [0], [0], [1], [0, 0, 1, 1], [], []>} : vector<2x32xbf16>, vector<32x128xbf16>, vector<2x128xf32> -> vector<2x128xf32>
    %39 = arith.addf %36, %38 : vector<2x128xf32>
    %40 = vector.extract_strided_slice %39 {offsets = [0, 0], sizes = [2, 96], strides = [1, 1]} : vector<2x128xf32> to vector<2x96xf32>
    %41 = arith.negf %40 : vector<2x96xf32>
    %42 = math.exp %41 : vector<2x96xf32>
    %cst_17 = arith.constant 1.000000e+00 : f32
    %43 = vector.broadcast %cst_17 : f32 to vector<2x96xf32>
    %44 = arith.addf %43, %42 : vector<2x96xf32>
    %45 = arith.divf %43, %44 : vector<2x96xf32>
    %46 = vector.extract_strided_slice %39 {offsets = [0, 96], sizes = [2, 32], strides = [1, 1]} : vector<2x128xf32> to vector<2x32xf32>
    %47 = math.tanh %46 : vector<2x32xf32>
    %48 = vector.extract_strided_slice %45 {offsets = [0, 0], sizes = [2, 32], strides = [1, 1]} : vector<2x96xf32> to vector<2x32xf32>
    %49 = vector.extract_strided_slice %45 {offsets = [0, 32], sizes = [2, 32], strides = [1, 1]} : vector<2x96xf32> to vector<2x32xf32>
    %50 = vector.extract_strided_slice %45 {offsets = [0, 64], sizes = [2, 32], strides = [1, 1]} : vector<2x96xf32> to vector<2x32xf32>
    %51 = arith.mulf %49, %30 : vector<2x32xf32>
    %52 = arith.mulf %48, %47 : vector<2x32xf32>
    %53 = arith.addf %51, %52 : vector<2x32xf32>
    %54 = math.tanh %53 : vector<2x32xf32>
    %55 = arith.mulf %50, %54 : vector<2x32xf32>
    %c2_i32_18 = arith.constant 2 : i32
    %c2_i32_19 = arith.constant 2 : i32
    %56 = arith.muli %c2_i32_18, %c2_i32_19 : i32
    %57 = tpu.assume_multiple %56, 2 : i32
    %58 = arith.index_cast %57 : i32 to index
    %c0_20 = arith.constant 0 : index
    %59 = vector.load %arg6[%58, %c0_20] : memref<16x128xf32, #tpu.memory_space<vmem>>, vector<2x128xf32>
    %60 = arith.truncf %55 : vector<2x32xf32> to vector<2x32xbf16>
    %cst_21 = arith.constant dense<0.000000e+00> : vector<2x128xf32>
    %61 = tpu.matmul %60, %7, %cst_21 {dimension_numbers = #tpu.dot_dimension_numbers<[1], [0], [0], [1], [0, 0, 1, 1], [], []>} : vector<2x32xbf16>, vector<32x128xbf16>, vector<2x128xf32> -> vector<2x128xf32>
    %62 = arith.addf %59, %61 : vector<2x128xf32>
    %63 = vector.extract_strided_slice %62 {offsets = [0, 0], sizes = [2, 96], strides = [1, 1]} : vector<2x128xf32> to vector<2x96xf32>
    %64 = arith.negf %63 : vector<2x96xf32>
    %65 = math.exp %64 : vector<2x96xf32>
    %cst_22 = arith.constant 1.000000e+00 : f32
    %66 = vector.broadcast %cst_22 : f32 to vector<2x96xf32>
    %67 = arith.addf %66, %65 : vector<2x96xf32>
    %68 = arith.divf %66, %67 : vector<2x96xf32>
    %69 = vector.extract_strided_slice %62 {offsets = [0, 96], sizes = [2, 32], strides = [1, 1]} : vector<2x128xf32> to vector<2x32xf32>
    %70 = math.tanh %69 : vector<2x32xf32>
    %71 = vector.extract_strided_slice %68 {offsets = [0, 0], sizes = [2, 32], strides = [1, 1]} : vector<2x96xf32> to vector<2x32xf32>
    %72 = vector.extract_strided_slice %68 {offsets = [0, 32], sizes = [2, 32], strides = [1, 1]} : vector<2x96xf32> to vector<2x32xf32>
    %73 = vector.extract_strided_slice %68 {offsets = [0, 64], sizes = [2, 32], strides = [1, 1]} : vector<2x96xf32> to vector<2x32xf32>
    %74 = arith.mulf %72, %53 : vector<2x32xf32>
    %75 = arith.mulf %71, %70 : vector<2x32xf32>
    %76 = arith.addf %74, %75 : vector<2x32xf32>
    %77 = math.tanh %76 : vector<2x32xf32>
    %78 = arith.mulf %73, %77 : vector<2x32xf32>
    %c3_i32 = arith.constant 3 : i32
    %c2_i32_23 = arith.constant 2 : i32
    %79 = arith.muli %c3_i32, %c2_i32_23 : i32
    %80 = tpu.assume_multiple %79, 2 : i32
    %81 = arith.index_cast %80 : i32 to index
    %c0_24 = arith.constant 0 : index
    %82 = vector.load %arg6[%81, %c0_24] : memref<16x128xf32, #tpu.memory_space<vmem>>, vector<2x128xf32>
    %83 = arith.truncf %78 : vector<2x32xf32> to vector<2x32xbf16>
    %cst_25 = arith.constant dense<0.000000e+00> : vector<2x128xf32>
    %84 = tpu.matmul %83, %7, %cst_25 {dimension_numbers = #tpu.dot_dimension_numbers<[1], [0], [0], [1], [0, 0, 1, 1], [], []>} : vector<2x32xbf16>, vector<32x128xbf16>, vector<2x128xf32> -> vector<2x128xf32>
    %85 = arith.addf %82, %84 : vector<2x128xf32>
    %86 = vector.extract_strided_slice %85 {offsets = [0, 0], sizes = [2, 96], strides = [1, 1]} : vector<2x128xf32> to vector<2x96xf32>
    %87 = arith.negf %86 : vector<2x96xf32>
    %88 = math.exp %87 : vector<2x96xf32>
    %cst_26 = arith.constant 1.000000e+00 : f32
    %89 = vector.broadcast %cst_26 : f32 to vector<2x96xf32>
    %90 = arith.addf %89, %88 : vector<2x96xf32>
    %91 = arith.divf %89, %90 : vector<2x96xf32>
    %92 = vector.extract_strided_slice %85 {offsets = [0, 96], sizes = [2, 32], strides = [1, 1]} : vector<2x128xf32> to vector<2x32xf32>
    %93 = math.tanh %92 : vector<2x32xf32>
    %94 = vector.extract_strided_slice %91 {offsets = [0, 0], sizes = [2, 32], strides = [1, 1]} : vector<2x96xf32> to vector<2x32xf32>
    %95 = vector.extract_strided_slice %91 {offsets = [0, 32], sizes = [2, 32], strides = [1, 1]} : vector<2x96xf32> to vector<2x32xf32>
    %96 = vector.extract_strided_slice %91 {offsets = [0, 64], sizes = [2, 32], strides = [1, 1]} : vector<2x96xf32> to vector<2x32xf32>
    %97 = arith.mulf %95, %76 : vector<2x32xf32>
    %98 = arith.mulf %94, %93 : vector<2x32xf32>
    %99 = arith.addf %97, %98 : vector<2x32xf32>
    %100 = math.tanh %99 : vector<2x32xf32>
    %101 = arith.mulf %96, %100 : vector<2x32xf32>
    %c4_i32 = arith.constant 4 : i32
    %c2_i32_27 = arith.constant 2 : i32
    %102 = arith.muli %c4_i32, %c2_i32_27 : i32
    %103 = tpu.assume_multiple %102, 2 : i32
    %104 = arith.index_cast %103 : i32 to index
    %c0_28 = arith.constant 0 : index
    %105 = vector.load %arg6[%104, %c0_28] : memref<16x128xf32, #tpu.memory_space<vmem>>, vector<2x128xf32>
    %106 = arith.truncf %101 : vector<2x32xf32> to vector<2x32xbf16>
    %cst_29 = arith.constant dense<0.000000e+00> : vector<2x128xf32>
    %107 = tpu.matmul %106, %7, %cst_29 {dimension_numbers = #tpu.dot_dimension_numbers<[1], [0], [0], [1], [0, 0, 1, 1], [], []>} : vector<2x32xbf16>, vector<32x128xbf16>, vector<2x128xf32> -> vector<2x128xf32>
    %108 = arith.addf %105, %107 : vector<2x128xf32>
    %109 = vector.extract_strided_slice %108 {offsets = [0, 0], sizes = [2, 96], strides = [1, 1]} : vector<2x128xf32> to vector<2x96xf32>
    %110 = arith.negf %109 : vector<2x96xf32>
    %111 = math.exp %110 : vector<2x96xf32>
    %cst_30 = arith.constant 1.000000e+00 : f32
    %112 = vector.broadcast %cst_30 : f32 to vector<2x96xf32>
    %113 = arith.addf %112, %111 : vector<2x96xf32>
    %114 = arith.divf %112, %113 : vector<2x96xf32>
    %115 = vector.extract_strided_slice %108 {offsets = [0, 96], sizes = [2, 32], strides = [1, 1]} : vector<2x128xf32> to vector<2x32xf32>
    %116 = math.tanh %115 : vector<2x32xf32>
    %117 = vector.extract_strided_slice %114 {offsets = [0, 0], sizes = [2, 32], strides = [1, 1]} : vector<2x96xf32> to vector<2x32xf32>
    %118 = vector.extract_strided_slice %114 {offsets = [0, 32], sizes = [2, 32], strides = [1, 1]} : vector<2x96xf32> to vector<2x32xf32>
    %119 = vector.extract_strided_slice %114 {offsets = [0, 64], sizes = [2, 32], strides = [1, 1]} : vector<2x96xf32> to vector<2x32xf32>
    %120 = arith.mulf %118, %99 : vector<2x32xf32>
    %121 = arith.mulf %117, %116 : vector<2x32xf32>
    %122 = arith.addf %120, %121 : vector<2x32xf32>
    %123 = math.tanh %122 : vector<2x32xf32>
    %124 = arith.mulf %119, %123 : vector<2x32xf32>
    %c5_i32 = arith.constant 5 : i32
    %c2_i32_31 = arith.constant 2 : i32
    %125 = arith.muli %c5_i32, %c2_i32_31 : i32
    %126 = tpu.assume_multiple %125, 2 : i32
    %127 = arith.index_cast %126 : i32 to index
    %c0_32 = arith.constant 0 : index
    %128 = vector.load %arg6[%127, %c0_32] : memref<16x128xf32, #tpu.memory_space<vmem>>, vector<2x128xf32>
    %129 = arith.truncf %124 : vector<2x32xf32> to vector<2x32xbf16>
    %cst_33 = arith.constant dense<0.000000e+00> : vector<2x128xf32>
    %130 = tpu.matmul %129, %7, %cst_33 {dimension_numbers = #tpu.dot_dimension_numbers<[1], [0], [0], [1], [0, 0, 1, 1], [], []>} : vector<2x32xbf16>, vector<32x128xbf16>, vector<2x128xf32> -> vector<2x128xf32>
    %131 = arith.addf %128, %130 : vector<2x128xf32>
    %132 = vector.extract_strided_slice %131 {offsets = [0, 0], sizes = [2, 96], strides = [1, 1]} : vector<2x128xf32> to vector<2x96xf32>
    %133 = arith.negf %132 : vector<2x96xf32>
    %134 = math.exp %133 : vector<2x96xf32>
    %cst_34 = arith.constant 1.000000e+00 : f32
    %135 = vector.broadcast %cst_34 : f32 to vector<2x96xf32>
    %136 = arith.addf %135, %134 : vector<2x96xf32>
    %137 = arith.divf %135, %136 : vector<2x96xf32>
    %138 = vector.extract_strided_slice %131 {offsets = [0, 96], sizes = [2, 32], strides = [1, 1]} : vector<2x128xf32> to vector<2x32xf32>
    %139 = math.tanh %138 : vector<2x32xf32>
    %140 = vector.extract_strided_slice %137 {offsets = [0, 0], sizes = [2, 32], strides = [1, 1]} : vector<2x96xf32> to vector<2x32xf32>
    %141 = vector.extract_strided_slice %137 {offsets = [0, 32], sizes = [2, 32], strides = [1, 1]} : vector<2x96xf32> to vector<2x32xf32>
    %142 = vector.extract_strided_slice %137 {offsets = [0, 64], sizes = [2, 32], strides = [1, 1]} : vector<2x96xf32> to vector<2x32xf32>
    %143 = arith.mulf %141, %122 : vector<2x32xf32>
    %144 = arith.mulf %140, %139 : vector<2x32xf32>
    %145 = arith.addf %143, %144 : vector<2x32xf32>
    %146 = math.tanh %145 : vector<2x32xf32>
    %147 = arith.mulf %142, %146 : vector<2x32xf32>
    %c6_i32 = arith.constant 6 : i32
    %c2_i32_35 = arith.constant 2 : i32
    %148 = arith.muli %c6_i32, %c2_i32_35 : i32
    %149 = tpu.assume_multiple %148, 2 : i32
    %150 = arith.index_cast %149 : i32 to index
    %c0_36 = arith.constant 0 : index
    %151 = vector.load %arg6[%150, %c0_36] : memref<16x128xf32, #tpu.memory_space<vmem>>, vector<2x128xf32>
    %152 = arith.truncf %147 : vector<2x32xf32> to vector<2x32xbf16>
    %cst_37 = arith.constant dense<0.000000e+00> : vector<2x128xf32>
    %153 = tpu.matmul %152, %7, %cst_37 {dimension_numbers = #tpu.dot_dimension_numbers<[1], [0], [0], [1], [0, 0, 1, 1], [], []>} : vector<2x32xbf16>, vector<32x128xbf16>, vector<2x128xf32> -> vector<2x128xf32>
    %154 = arith.addf %151, %153 : vector<2x128xf32>
    %155 = vector.extract_strided_slice %154 {offsets = [0, 0], sizes = [2, 96], strides = [1, 1]} : vector<2x128xf32> to vector<2x96xf32>
    %156 = arith.negf %155 : vector<2x96xf32>
    %157 = math.exp %156 : vector<2x96xf32>
    %cst_38 = arith.constant 1.000000e+00 : f32
    %158 = vector.broadcast %cst_38 : f32 to vector<2x96xf32>
    %159 = arith.addf %158, %157 : vector<2x96xf32>
    %160 = arith.divf %158, %159 : vector<2x96xf32>
    %161 = vector.extract_strided_slice %154 {offsets = [0, 96], sizes = [2, 32], strides = [1, 1]} : vector<2x128xf32> to vector<2x32xf32>
    %162 = math.tanh %161 : vector<2x32xf32>
    %163 = vector.extract_strided_slice %160 {offsets = [0, 0], sizes = [2, 32], strides = [1, 1]} : vector<2x96xf32> to vector<2x32xf32>
    %164 = vector.extract_strided_slice %160 {offsets = [0, 32], sizes = [2, 32], strides = [1, 1]} : vector<2x96xf32> to vector<2x32xf32>
    %165 = vector.extract_strided_slice %160 {offsets = [0, 64], sizes = [2, 32], strides = [1, 1]} : vector<2x96xf32> to vector<2x32xf32>
    %166 = arith.mulf %164, %145 : vector<2x32xf32>
    %167 = arith.mulf %163, %162 : vector<2x32xf32>
    %168 = arith.addf %166, %167 : vector<2x32xf32>
    %169 = math.tanh %168 : vector<2x32xf32>
    %170 = arith.mulf %165, %169 : vector<2x32xf32>
    %c7_i32 = arith.constant 7 : i32
    %c2_i32_39 = arith.constant 2 : i32
    %171 = arith.muli %c7_i32, %c2_i32_39 : i32
    %172 = tpu.assume_multiple %171, 2 : i32
    %173 = arith.index_cast %172 : i32 to index
    %c0_40 = arith.constant 0 : index
    %174 = vector.load %arg6[%173, %c0_40] : memref<16x128xf32, #tpu.memory_space<vmem>>, vector<2x128xf32>
    %175 = arith.truncf %170 : vector<2x32xf32> to vector<2x32xbf16>
    %cst_41 = arith.constant dense<0.000000e+00> : vector<2x128xf32>
    %176 = tpu.matmul %175, %7, %cst_41 {dimension_numbers = #tpu.dot_dimension_numbers<[1], [0], [0], [1], [0, 0, 1, 1], [], []>} : vector<2x32xbf16>, vector<32x128xbf16>, vector<2x128xf32> -> vector<2x128xf32>
    %177 = arith.addf %174, %176 : vector<2x128xf32>
    %178 = vector.extract_strided_slice %177 {offsets = [0, 0], sizes = [2, 96], strides = [1, 1]} : vector<2x128xf32> to vector<2x96xf32>
    %179 = arith.negf %178 : vector<2x96xf32>
    %180 = math.exp %179 : vector<2x96xf32>
    %cst_42 = arith.constant 1.000000e+00 : f32
    %181 = vector.broadcast %cst_42 : f32 to vector<2x96xf32>
    %182 = arith.addf %181, %180 : vector<2x96xf32>
    %183 = arith.divf %181, %182 : vector<2x96xf32>
    %184 = vector.extract_strided_slice %177 {offsets = [0, 96], sizes = [2, 32], strides = [1, 1]} : vector<2x128xf32> to vector<2x32xf32>
    %185 = math.tanh %184 : vector<2x32xf32>
    %186 = vector.extract_strided_slice %183 {offsets = [0, 0], sizes = [2, 32], strides = [1, 1]} : vector<2x96xf32> to vector<2x32xf32>
    %187 = vector.extract_strided_slice %183 {offsets = [0, 32], sizes = [2, 32], strides = [1, 1]} : vector<2x96xf32> to vector<2x32xf32>
    %188 = vector.extract_strided_slice %183 {offsets = [0, 64], sizes = [2, 32], strides = [1, 1]} : vector<2x96xf32> to vector<2x32xf32>
    %189 = arith.mulf %187, %168 : vector<2x32xf32>
    %190 = arith.mulf %186, %185 : vector<2x32xf32>
    %191 = arith.addf %189, %190 : vector<2x32xf32>
    %192 = math.tanh %191 : vector<2x32xf32>
    %193 = arith.mulf %188, %192 : vector<2x32xf32>
    %c8_i32 = arith.constant 8 : i32
    %194 = math.tanh %193 : vector<2x32xf32>
    %195 = math.tanh %191 : vector<2x32xf32>
    %c0_43 = arith.constant 0 : index
    %c0_44 = arith.constant 0 : index
    %196 = vector.load %arg4[%c0_43, %c0_44] : memref<33x4xf32, #tpu.memory_space<vmem>>, vector<32x4xf32>
    %cst_45 = arith.constant dense<0.000000e+00> : vector<2x4xf32>
    %197 = tpu.matmul %194, %196, %cst_45 {dimension_numbers = #tpu.dot_dimension_numbers<[1], [0], [0], [1], [0, 0, 1, 1], [], []>} : vector<2x32xf32>, vector<32x4xf32>, vector<2x4xf32> -> vector<2x4xf32>
    %c32_46 = arith.constant 32 : index
    %c0_47 = arith.constant 0 : index
    %198 = vector.load %arg4[%c32_46, %c0_47] : memref<33x4xf32, #tpu.memory_space<vmem>>, vector<1x4xf32>
    %199 = vector.broadcast %198 : vector<1x4xf32> to vector<2x4xf32>
    %200 = arith.addf %197, %199 : vector<2x4xf32>
    %201 = tpu.concatenate %194, %195, %200 in 1 : vector<2x32xf32>, vector<2x32xf32>, vector<2x4xf32> -> vector<2x68xf32>
    %c0_48 = arith.constant 0 : index
    %c0_49 = arith.constant 0 : index
    %202 = vector.load %arg5[%c0_48, %c0_49] : memref<2x68xf32, #tpu.memory_space<vmem>>, vector<2x68xf32>
    tpu.vector_store %arg5[%c0_48, %c0_49], %201 {strides = array<i32>} : memref<2x68xf32, #tpu.memory_space<vmem>>, vector<2x68xf32>,
    return
  }
}

</mosaic_0001>

<bundles_post_ra>
// kernel: tpu_custom_call.1
= control target key start
LH: loop header
LB: loop body
LE: loop exit
PB: predicated region body
PF: predicated region fallthrough
CT: control target
= control target key end

     0   :  { %vm38_vm0 = vcmask 1043456   ;;  %vm34_vm1 = vcmask 64512   ;;  %s852_s0 = inlined_call_operand.vmem [shape: bf16[16,8], index: 0, kind: input, shape index: {}]   ;;  %s853_s1 = inlined_call_operand.vmem [shape: f32[2,64], index: 1, kind: input, shape index: {}]   ;;  %s854_s2 = inlined_call_operand.vmem [shape: bf16[40,128], index: 2, kind: input, shape index: {}]   ;;  %s855_s3 = inlined_call_operand.vmem [shape: f32[1,128], index: 3, kind: input, shape index: {}]   ;;  %s856_s4 = inlined_call_operand.vmem [shape: f32[33,4], index: 4, kind: input, shape index: {}]   ;;  %s857_s5 = inlined_call_operand.hbm [shape: f32[2,68], index: 5, kind: output, shape index: {}]  }
   0x1   :  { %v24_v0 = vld [vmem:[%s854_s2] sm:$0xf]  ;;  %v642_v1 = vld [vmem:[%s854_s2 + $0xc] sm:$0xff]  ;;  %v641_v4 = vld [vmem:[%s854_s2 + $0x4] sm:$0xff] }
   0x2   :  { %v40_v2 = vsel %vm38_vm0, %v24_v0, 0  ;;  %v640_v3 = vld [vmem:[%s852_s0] sm:$0xff]  ;;  %87 = vmatpush.bf16.msra.mxu1 %v642_v1  ;;  %147 = vmatpush.bf16.msra.mxu2 %v642_v1 }
   0x3   :  { %49 = vmatpush.bf16.msra.mxu0 %v40_v2  ;;  %v62_v5 = vld [vmem:[%s853_s1] sm:$0x3]  ;;  %207 = vmatpush.bf16.msra.mxu3 %v642_v1 }
   0x4   :  { %10 = vsyncpa [#allocation4], 0  ;;  %v64_v6 = vpack.c.bf16 %v62_v5, %v62_v5  ;;  %vm77_vm2 = vcmask 261120   ;;  %v646_v7 = vld [vmem:[%s855_s3] ss:$0 sm:$0xff]  ;;  %s740_s2 = smov 32  }
   0x5   :  { %s741_s3 = smov 64   ;;  %s742_s13 = smov [#allocation3]  }
   0x6   :  { %614 = vmatmul.msk.bf16.vlgmr.msra.gmra.mxu0 %vm34_vm1, %v640_v3  ;;  %88 = vmatpush.bf16.msra.mxu1 %v641_v4  ;;  %s599_s14 = sshll.u32 %s742_s13, 4  ;;  %s601_s17 = sshll.u32 %s857_s5, 4  ;;  %s600_s14 = int_to_ptr.vmem [resolvable:$true] %s599_s14  ;;  %s602_s17 = int_to_ptr.hbm [resolvable:$true] %s601_s17 }
   0x7   :  { %267 = vmatpush.bf16.msrb.mxu0 %v642_v1  ;;  %148 = vmatpush.bf16.msra.mxu2 %v641_v4 }
   0x8   :  { %208 = vmatpush.bf16.msra.mxu3 %v641_v4 }
   0x9   :  { %623 = vmatmul.msk.bf16.vlgmr.msra.gmra.mxu1 %vm77_vm2, %v64_v6 }
   0xa   :  { %327 = vmatpush.bf16.msrb.mxu1 %v642_v1 }
   0xb   :  { %268 = vmatpush.bf16.msrb.mxu0 %v641_v4  ;;  %387 = vmatpush.bf16.msrb.mxu2 %v642_v1 }
   0xc   :  { %447 = vmatpush.bf16.msrb.mxu3 %v642_v1 }
   0xe   :  { %328 = vmatpush.bf16.msrb.mxu1 %v641_v4 }
   0xf   :  { %507 = vmatpush.bf16.msra.mxu0 %v642_v1  ;;  %388 = vmatpush.bf16.msrb.mxu2 %v641_v4 }
  0x10   :  { %448 = vmatpush.bf16.msrb.mxu3 %v641_v4 }
  0x13   :  { %508 = vmatpush.bf16.msra.mxu0 %v641_v4 }
  0x83   :  { %v51_v8 = vpop.f32.mrf.mxu0 }
  0x84   :  { %v52_v9 = vadd.f32 %v646_v7, %v51_v8 }
  0x86   :  { %56 = vst [vmem:[#allocation2] sm:$0xff] %v52_v9  ;;  %v90_v10 = vpop.f32.mrf.mxu1 }
  0x8b   :  { %v53_v11 = vpop.f32.mrf.mxu0 }
  0x8c   :  { %v54_v12 = vadd.f32 %v646_v7, %v53_v11 }
  0x8d   :  { %v63_v13 = vld [vmem:[#allocation2] sm:$0x3]  ;;  %v133_v40 = vld [vmem:[#allocation2 + $0x2] sm:$0x3]  ;;  %v193_v4 = vld [vmem:[#allocation2 + $0x4] sm:$0x3] }
  0x8e   :  { %v94_v14 = vadd.f32 %v90_v10, %v63_v13  ;;  %57 = vst [vmem:[#allocation2 + $0x8] sm:$0xff] %v54_v12  ;;  %v92_v15 = vpop.f32.mrf.mxu1 }
  0x90   :  { %648 = vtanh.f32 %v94_v14  ;;  %v624_v17 = vmul.f32 -1.442695, %v94_v14 }
  0x92   :  { %650 = vpow2.f32 %v624_v17 }
  0x96   :  { %v649_v16 = vpop.eup %648 }
  0x97   :  { %117 = vrot.lane.b32.xlu0 %v649_v16, %s740_s2 }
  0x98   :  { %v651_v18 = vpop.eup %650 }
  0x99   :  { %v98_v19 = vadd.f32 1.0, %v651_v18 }
  0x9b   :  { %652 = vrcp.f32 %v98_v19  ;;  %v110_v25 = vand.u32 2147483648, %v98_v19  ;;  %vm104_vm4 = vweird.f32 %v98_v19  ;;  %v108_v26 = vand.u32 2147483647, %v98_v19 }
  0x9d   :  { %v111_v28 = vor.u32 1.1754944e-38, %v110_v25  ;;  %vm109_vm6 = vcmp.eq.f32.partialorder %v108_v26, 8.507059e+37 }
  0xa1   :  { %v653_v20 = vpop.eup %652 }
  0xa2   :  { %v100_v21 = vmul.f32 %v653_v20, %v98_v19  ;;  %vm105_vm3 = vweird.f32 %v653_v20 }
  0xa3   :  { %vm106_vm5 = vmor %vm104_vm4, %vm105_vm3 }
  0xa4   :  { %v101_v22 = vsub.f32 1.0, %v100_v21 }
  0xa6   :  { %v102_v23 = vmul.f32 %v653_v20, %v101_v22 }
  0xa8   :  { %v103_v24 = vadd.f32 %v653_v20, %v102_v23 }
  0xaa   :  { %v107_v27 = vsel %vm106_vm5, %v653_v20, %v103_v24 }
  0xab   :  { %v112_v30 = vsel %vm109_vm6, %v111_v28, %v107_v27 }
  0xac   :  { %v115_v32 = vmul.f32 %v112_v30, %v62_v5 }
 0x109   :  { %v118_v29 = vpop.permute.xlu0 %117 }
 0x10a   :  { %v120_v31 = vmul.f32 %v118_v29, %v112_v30 }
 0x10c   :  { %122 = vrot.lane.b32.xlu0 %v120_v31, %s740_s2 }
 0x17e   :  { %v123_v33 = vpop.permute.xlu0 %122 }
 0x17f   :  { %v125_v34 = vadd.f32 %v123_v33, %v115_v32  ;;  %v253_v32 = vld [vmem:[#allocation2 + $0x6] sm:$0x3] }
 0x181   :  { %654 = vtanh.f32 %v125_v34 }
 0x187   :  { %v655_v35 = vpop.eup %654 }
 0x188   :  { %128 = vrot.lane.b32.xlu1 %v655_v35, %s740_s2 }
 0x1fa   :  { %v129_v36 = vpop.permute.xlu1 %128 }
 0x1fb   :  { %v131_v37 = vmul.f32 %v129_v36, %v112_v30 }
 0x1fd   :  { %v134_v38 = vpack.c.bf16 %v131_v37, %v131_v37 }
 0x1ff   :  { %136 = vrot.lane.b32.xlu1 %v134_v38, %s741_s3 }
 0x271   :  { %v137_v39 = vpop.permute.xlu1 %136 }
 0x272   :  { %625 = vmatmul.msk.bf16.vlgmr.msra.gmra.mxu2 %vm77_vm2, %v137_v39 }
 0x2f5   :  { %v150_v41 = vpop.f32.mrf.mxu2 }
 0x2f6   :  { %v154_v42 = vadd.f32 %v150_v41, %v133_v40 }
 0x2f8   :  { %656 = vtanh.f32 %v154_v42  ;;  %v626_v45 = vmul.f32 -1.442695, %v154_v42 }
 0x2fa   :  { %658 = vpow2.f32 %v626_v45 }
 0x2fd   :  { %v152_v43 = vpop.f32.mrf.mxu2 }
 0x2fe   :  { %v657_v44 = vpop.eup %656 }
 0x2ff   :  { %177 = vrot.lane.b32.xlu2 %v657_v44, %s740_s2 }
 0x300   :  { %v659_v46 = vpop.eup %658 }
 0x301   :  { %v158_v47 = vadd.f32 1.0, %v659_v46 }
 0x303   :  { %660 = vrcp.f32 %v158_v47  ;;  %v170_v53 = vand.u32 2147483648, %v158_v47  ;;  %vm164_vm8 = vweird.f32 %v158_v47  ;;  %v168_v54 = vand.u32 2147483647, %v158_v47 }
 0x305   :  { %v171_v56 = vor.u32 1.1754944e-38, %v170_v53  ;;  %vm169_vm10 = vcmp.eq.f32.partialorder %v168_v54, 8.507059e+37 }
 0x309   :  { %v661_v48 = vpop.eup %660 }
 0x30a   :  { %v160_v49 = vmul.f32 %v661_v48, %v158_v47  ;;  %vm165_vm7 = vweird.f32 %v661_v48 }
 0x30b   :  { %vm166_vm9 = vmor %vm164_vm8, %vm165_vm7 }
 0x30c   :  { %v161_v50 = vsub.f32 1.0, %v160_v49 }
 0x30e   :  { %v162_v51 = vmul.f32 %v661_v48, %v161_v50 }
 0x310   :  { %v163_v52 = vadd.f32 %v661_v48, %v162_v51 }
 0x312   :  { %v167_v55 = vsel %vm166_vm9, %v661_v48, %v163_v52 }
 0x313   :  { %v172_v58 = vsel %vm169_vm10, %v171_v56, %v167_v55 }
 0x314   :  { %v175_v60 = vmul.f32 %v172_v58, %v125_v34 }
 0x359   :  { %v178_v57 = vpop.permute.xlu2 %177 }
 0x35a   :  { %v180_v59 = vmul.f32 %v178_v57, %v172_v58 }
 0x35c   :  { %182 = vrot.lane.b32.xlu2 %v180_v59, %s740_s2 }
 0x3b6   :  { %v183_v61 = vpop.permute.xlu2 %182 }
 0x3b7   :  { %v185_v62 = vadd.f32 %v183_v61, %v175_v60  ;;  %v313_v60 = vld [vmem:[#allocation2 + $0x8] sm:$0x3] }
 0x3b9   :  { %662 = vtanh.f32 %v185_v62 }
 0x3bf   :  { %v663_v63 = vpop.eup %662 }
 0x3c0   :  { %188 = vrot.lane.b32.xlu0 %v663_v63, %s740_s2 }
 0x432   :  { %v189_v0 = vpop.permute.xlu0 %188 }
 0x433   :  { %v191_v1 = vmul.f32 %v189_v0, %v172_v58 }
 0x435   :  { %v194_v2 = vpack.c.bf16 %v191_v1, %v191_v1 }
 0x437   :  { %196 = vrot.lane.b32.xlu1 %v194_v2, %s741_s3 }
 0x4a9   :  { %v197_v3 = vpop.permute.xlu1 %196 }
 0x4aa   :  { %627 = vmatmul.msk.bf16.vlgmr.msra.gmra.mxu3 %vm77_vm2, %v197_v3 }
 0x52d   :  { %v210_v5 = vpop.f32.mrf.mxu3 }
 0x52e   :  { %v214_v6 = vadd.f32 %v210_v5, %v193_v4 }
 0x530   :  { %664 = vtanh.f32 %v214_v6  ;;  %v628_v9 = vmul.f32 -1.442695, %v214_v6 }
 0x532   :  { %666 = vpow2.f32 %v628_v9 }
 0x535   :  { %v212_v7 = vpop.f32.mrf.mxu3 }
 0x536   :  { %v665_v8 = vpop.eup %664 }
 0x537   :  { %237 = vrot.lane.b32.xlu2 %v665_v8, %s740_s2 }
 0x538   :  { %v667_v10 = vpop.eup %666 }
 0x539   :  { %v218_v11 = vadd.f32 1.0, %v667_v10 }
 0x53b   :  { %668 = vrcp.f32 %v218_v11  ;;  %v230_v17 = vand.u32 2147483648, %v218_v11  ;;  %vm224_vm12 = vweird.f32 %v218_v11  ;;  %v228_v18 = vand.u32 2147483647, %v218_v11 }
 0x53d   :  { %v231_v20 = vor.u32 1.1754944e-38, %v230_v17  ;;  %vm229_vm14 = vcmp.eq.f32.partialorder %v228_v18, 8.507059e+37 }
 0x541   :  { %v669_v12 = vpop.eup %668 }
 0x542   :  { %v220_v13 = vmul.f32 %v669_v12, %v218_v11  ;;  %vm225_vm11 = vweird.f32 %v669_v12 }
 0x543   :  { %vm226_vm13 = vmor %vm224_vm12, %vm225_vm11 }
 0x544   :  { %v221_v14 = vsub.f32 1.0, %v220_v13 }
 0x546   :  { %v222_v15 = vmul.f32 %v669_v12, %v221_v14 }
 0x548   :  { %v223_v16 = vadd.f32 %v669_v12, %v222_v15 }
 0x54a   :  { %v227_v19 = vsel %vm226_vm13, %v669_v12, %v223_v16 }
 0x54b   :  { %v232_v22 = vsel %vm229_vm14, %v231_v20, %v227_v19 }
 0x54c   :  { %v235_v24 = vmul.f32 %v232_v22, %v185_v62 }
 0x591   :  { %v238_v21 = vpop.permute.xlu2 %237 }
 0x592   :  { %v240_v23 = vmul.f32 %v238_v21, %v232_v22 }
 0x594   :  { %242 = vrot.lane.b32.xlu0 %v240_v23, %s740_s2 }
 0x606   :  { %v243_v25 = vpop.permute.xlu0 %242 }
 0x607   :  { %v245_v26 = vadd.f32 %v243_v25, %v235_v24  ;;  %v373_v24 = vld [vmem:[#allocation2 + $0xa] sm:$0x3] }
 0x609   :  { %670 = vtanh.f32 %v245_v26 }
 0x60f   :  { %v671_v27 = vpop.eup %670 }
 0x610   :  { %248 = vrot.lane.b32.xlu1 %v671_v27, %s740_s2 }
 0x682   :  { %v249_v28 = vpop.permute.xlu1 %248 }
 0x683   :  { %v251_v29 = vmul.f32 %v249_v28, %v232_v22 }
 0x685   :  { %v254_v30 = vpack.c.bf16 %v251_v29, %v251_v29 }
 0x687   :  { %256 = vrot.lane.b32.xlu2 %v254_v30, %s741_s3 }
 0x6e1   :  { %v257_v31 = vpop.permute.xlu2 %256 }
 0x6e2   :  { %629 = vmatmul.msk.bf16.vlgmr.msrb.gmra.mxu0 %vm77_vm2, %v257_v31 }
 0x75f   :  { %v270_v33 = vpop.f32.mrf.mxu0 }
 0x760   :  { %v274_v34 = vadd.f32 %v270_v33, %v253_v32 }
 0x762   :  { %672 = vtanh.f32 %v274_v34  ;;  %v630_v37 = vmul.f32 -1.442695, %v274_v34 }
 0x764   :  { %674 = vpow2.f32 %v630_v37 }
 0x767   :  { %v272_v35 = vpop.f32.mrf.mxu0 }
 0x768   :  { %v673_v36 = vpop.eup %672 }
 0x769   :  { %297 = vrot.lane.b32.xlu0 %v673_v36, %s740_s2 }
 0x76a   :  { %v675_v38 = vpop.eup %674 }
 0x76b   :  { %v278_v39 = vadd.f32 1.0, %v675_v38 }
 0x76d   :  { %676 = vrcp.f32 %v278_v39  ;;  %v290_v45 = vand.u32 2147483648, %v278_v39  ;;  %vm284_vm0 = vweird.f32 %v278_v39  ;;  %v288_v46 = vand.u32 2147483647, %v278_v39 }
 0x76f   :  { %v291_v48 = vor.u32 1.1754944e-38, %v290_v45  ;;  %vm289_vm3 = vcmp.eq.f32.partialorder %v288_v46, 8.507059e+37 }
 0x773   :  { %v677_v40 = vpop.eup %676 }
 0x774   :  { %v280_v41 = vmul.f32 %v677_v40, %v278_v39  ;;  %vm285_vm15 = vweird.f32 %v677_v40 }
 0x775   :  { %vm286_vm1 = vmor %vm284_vm0, %vm285_vm15 }
 0x776   :  { %v281_v42 = vsub.f32 1.0, %v280_v41 }
 0x778   :  { %v282_v43 = vmul.f32 %v677_v40, %v281_v42 }
 0x77a   :  { %v283_v44 = vadd.f32 %v677_v40, %v282_v43 }
 0x77c   :  { %v287_v47 = vsel %vm286_vm1, %v677_v40, %v283_v44 }
 0x77d   :  { %v292_v50 = vsel %vm289_vm3, %v291_v48, %v287_v47 }
 0x77e   :  { %v295_v52 = vmul.f32 %v292_v50, %v245_v26 }
 0x7db   :  { %v298_v49 = vpop.permute.xlu0 %297 }
 0x7dc   :  { %v300_v51 = vmul.f32 %v298_v49, %v292_v50 }
 0x7de   :  { %302 = vrot.lane.b32.xlu1 %v300_v51, %s740_s2 }
 0x850   :  { %v303_v53 = vpop.permute.xlu1 %302 }
 0x851   :  { %v305_v54 = vadd.f32 %v303_v53, %v295_v52  ;;  %v433_v52 = vld [vmem:[#allocation2 + $0xc] sm:$0x3] }
 0x853   :  { %678 = vtanh.f32 %v305_v54 }
 0x859   :  { %v679_v55 = vpop.eup %678 }
 0x85a   :  { %308 = vrot.lane.b32.xlu2 %v679_v55, %s740_s2 }
 0x8b4   :  { %v309_v56 = vpop.permute.xlu2 %308 }
 0x8b5   :  { %v311_v57 = vmul.f32 %v309_v56, %v292_v50 }
 0x8b7   :  { %v314_v58 = vpack.c.bf16 %v311_v57, %v311_v57 }
 0x8b9   :  { %316 = vrot.lane.b32.xlu0 %v314_v58, %s741_s3 }
 0x92b   :  { %v317_v59 = vpop.permute.xlu0 %316 }
 0x92c   :  { %631 = vmatmul.msk.bf16.vlgmr.msrb.gmra.mxu1 %vm77_vm2, %v317_v59 }
 0x9a9   :  { %v330_v61 = vpop.f32.mrf.mxu1 }
 0x9aa   :  { %v334_v62 = vadd.f32 %v330_v61, %v313_v60 }
 0x9ac   :  { %680 = vtanh.f32 %v334_v62  ;;  %v632_v1 = vmul.f32 -1.442695, %v334_v62 }
 0x9ae   :  { %682 = vpow2.f32 %v632_v1 }
 0x9b1   :  { %v332_v63 = vpop.f32.mrf.mxu1 }
 0x9b2   :  { %v681_v0 = vpop.eup %680 }
 0x9b3   :  { %357 = vrot.lane.b32.xlu1 %v681_v0, %s740_s2 }
 0x9b4   :  { %v683_v2 = vpop.eup %682 }
 0x9b5   :  { %v338_v3 = vadd.f32 1.0, %v683_v2 }
 0x9b7   :  { %684 = vrcp.f32 %v338_v3  ;;  %v350_v9 = vand.u32 2147483648, %v338_v3  ;;  %vm344_vm5 = vweird.f32 %v338_v3  ;;  %v348_v10 = vand.u32 2147483647, %v338_v3 }
 0x9b9   :  { %v351_v12 = vor.u32 1.1754944e-38, %v350_v9  ;;  %vm349_vm7 = vcmp.eq.f32.partialorder %v348_v10, 8.507059e+37 }
 0x9bd   :  { %v685_v4 = vpop.eup %684 }
 0x9be   :  { %v340_v5 = vmul.f32 %v685_v4, %v338_v3  ;;  %vm345_vm4 = vweird.f32 %v685_v4 }
 0x9bf   :  { %vm346_vm6 = vmor %vm344_vm5, %vm345_vm4  ;;  %vm590_vm5 = vcmask 523264  }
 0x9c0   :  { %v341_v6 = vsub.f32 1.0, %v340_v5 }
 0x9c2   :  { %v342_v7 = vmul.f32 %v685_v4, %v341_v6 }
 0x9c4   :  { %v343_v8 = vadd.f32 %v685_v4, %v342_v7 }
 0x9c6   :  { %v347_v11 = vsel %vm346_vm6, %v685_v4, %v343_v8  ;;  %vm592_vm6 = vcmask 549888  }
 0x9c7   :  { %v352_v14 = vsel %vm349_vm7, %v351_v12, %v347_v11 }
 0x9c8   :  { %v355_v16 = vmul.f32 %v352_v14, %v305_v54 }
 0xa25   :  { %v358_v13 = vpop.permute.xlu1 %357 }
 0xa26   :  { %v360_v15 = vmul.f32 %v358_v13, %v352_v14 }
 0xa28   :  { %362 = vrot.lane.b32.xlu2 %v360_v15, %s740_s2 }
 0xa82   :  { %v363_v17 = vpop.permute.xlu2 %362 }
 0xa83   :  { %v365_v18 = vadd.f32 %v363_v17, %v355_v16  ;;  %v493_v16 = vld [vmem:[#allocation2 + $0xe] sm:$0x3] }
 0xa85   :  { %686 = vtanh.f32 %v365_v18 }
 0xa8b   :  { %v687_v19 = vpop.eup %686 }
 0xa8c   :  { %368 = vrot.lane.b32.xlu0 %v687_v19, %s740_s2 }
 0xafe   :  { %v369_v20 = vpop.permute.xlu0 %368 }
 0xaff   :  { %v371_v21 = vmul.f32 %v369_v20, %v352_v14 }
 0xb01   :  { %v374_v22 = vpack.c.bf16 %v371_v21, %v371_v21 }
 0xb03   :  { %376 = vrot.lane.b32.xlu1 %v374_v22, %s741_s3 }
 0xb75   :  { %v377_v23 = vpop.permute.xlu1 %376 }
 0xb76   :  { %633 = vmatmul.msk.bf16.vlgmr.msrb.gmra.mxu2 %vm77_vm2, %v377_v23 }
 0xbf9   :  { %v390_v25 = vpop.f32.mrf.mxu2 }
 0xbfa   :  { %v394_v26 = vadd.f32 %v390_v25, %v373_v24 }
 0xbfc   :  { %688 = vtanh.f32 %v394_v26  ;;  %v634_v29 = vmul.f32 -1.442695, %v394_v26 }
 0xbfe   :  { %690 = vpow2.f32 %v634_v29 }
 0xc01   :  { %v392_v27 = vpop.f32.mrf.mxu2 }
 0xc02   :  { %v689_v28 = vpop.eup %688 }
 0xc03   :  { %417 = vrot.lane.b32.xlu2 %v689_v28, %s740_s2 }
 0xc04   :  { %v691_v30 = vpop.eup %690 }
 0xc05   :  { %v398_v31 = vadd.f32 1.0, %v691_v30 }
 0xc07   :  { %692 = vrcp.f32 %v398_v31  ;;  %v410_v37 = vand.u32 2147483648, %v398_v31  ;;  %vm404_vm9 = vweird.f32 %v398_v31  ;;  %v408_v38 = vand.u32 2147483647, %v398_v31 }
 0xc09   :  { %v411_v40 = vor.u32 1.1754944e-38, %v410_v37  ;;  %vm409_vm11 = vcmp.eq.f32.partialorder %v408_v38, 8.507059e+37 }
 0xc0d   :  { %v693_v32 = vpop.eup %692 }
 0xc0e   :  { %v400_v33 = vmul.f32 %v693_v32, %v398_v31  ;;  %vm405_vm8 = vweird.f32 %v693_v32 }
 0xc0f   :  { %vm406_vm10 = vmor %vm404_vm9, %vm405_vm8 }
 0xc10   :  { %v401_v34 = vsub.f32 1.0, %v400_v33 }
 0xc12   :  { %v402_v35 = vmul.f32 %v693_v32, %v401_v34 }
 0xc14   :  { %v403_v36 = vadd.f32 %v693_v32, %v402_v35 }
 0xc16   :  { %v407_v39 = vsel %vm406_vm10, %v693_v32, %v403_v36 }
 0xc17   :  { %v412_v42 = vsel %vm409_vm11, %v411_v40, %v407_v39  ;;  %v556_v40 = vld [vmem:[%s856_s4 + $0x18] sm:$0xff] }
 0xc18   :  { %v415_v44 = vmul.f32 %v412_v42, %v365_v18  ;;  %576 = vmatpush.msra.mxu1 %v556_v40 }
 0xc5d   :  { %v418_v41 = vpop.permute.xlu2 %417 }
 0xc5e   :  { %v420_v43 = vmul.f32 %v418_v41, %v412_v42  ;;  %v555_v41 = vld [vmem:[%s856_s4 + $0x10] sm:$0xff] }
 0xc5f   :  { %577 = vmatpush.msra.mxu1 %v555_v41 }
 0xc60   :  { %422 = vrot.lane.b32.xlu0 %v420_v43, %s740_s2  ;;  %v553_v43 = vld [vmem:[%s856_s4] sm:$0xff] }
 0xcd2   :  { %v423_v45 = vpop.permute.xlu0 %422 }
 0xcd3   :  { %v425_v46 = vadd.f32 %v423_v45, %v415_v44 }
 0xcd5   :  { %694 = vtanh.f32 %v425_v46 }
 0xcdb   :  { %v695_v47 = vpop.eup %694 }
 0xcdc   :  { %428 = vrot.lane.b32.xlu1 %v695_v47, %s740_s2 }
 0xd4e   :  { %v429_v48 = vpop.permute.xlu1 %428 }
 0xd4f   :  { %v431_v49 = vmul.f32 %v429_v48, %v412_v42  ;;  %v554_v42 = vld [vmem:[%s856_s4 + $0x8] sm:$0xff]  ;;  %v647_v48 = vld [vmem:[%s856_s4 + $0x20] ss:$0 sm:$0xff] }
 0xd50   :  { %578 = vmatpush.msra.mxu1 %v554_v42 }
 0xd51   :  { %v434_v50 = vpack.c.bf16 %v431_v49, %v431_v49 }
 0xd52   :  { %579 = vmatpush.msra.mxu1 %v553_v43 }
 0xd53   :  { %436 = vrot.lane.b32.xlu2 %v434_v50, %s741_s3 }
 0xdad   :  { %v437_v51 = vpop.permute.xlu2 %436 }
 0xdae   :  { %635 = vmatmul.msk.bf16.vlgmr.msrb.gmra.mxu3 %vm77_vm2, %v437_v51 }
 0xe31   :  { %v450_v53 = vpop.f32.mrf.mxu3 }
 0xe32   :  { %v454_v54 = vadd.f32 %v450_v53, %v433_v52 }
 0xe34   :  { %696 = vtanh.f32 %v454_v54  ;;  %v636_v57 = vmul.f32 -1.442695, %v454_v54 }
 0xe36   :  { %698 = vpow2.f32 %v636_v57 }
 0xe39   :  { %v452_v55 = vpop.f32.mrf.mxu3 }
 0xe3a   :  { %v697_v56 = vpop.eup %696 }
 0xe3b   :  { %477 = vrot.lane.b32.xlu0 %v697_v56, %s740_s2 }
 0xe3c   :  { %v699_v58 = vpop.eup %698 }
 0xe3d   :  { %v458_v59 = vadd.f32 1.0, %v699_v58 }
 0xe3f   :  { %700 = vrcp.f32 %v458_v59  ;;  %v470_v1 = vand.u32 2147483648, %v458_v59  ;;  %vm464_vm13 = vweird.f32 %v458_v59  ;;  %v468_v2 = vand.u32 2147483647, %v458_v59 }
 0xe41   :  { %v471_v4 = vor.u32 1.1754944e-38, %v470_v1  ;;  %vm469_vm15 = vcmp.eq.f32.partialorder %v468_v2, 8.507059e+37 }
 0xe45   :  { %v701_v60 = vpop.eup %700 }
 0xe46   :  { %v460_v61 = vmul.f32 %v701_v60, %v458_v59  ;;  %vm465_vm12 = vweird.f32 %v701_v60 }
 0xe47   :  { %vm466_vm14 = vmor %vm464_vm13, %vm465_vm12 }
 0xe48   :  { %v461_v62 = vsub.f32 1.0, %v460_v61 }
 0xe4a   :  { %v462_v63 = vmul.f32 %v701_v60, %v461_v62 }
 0xe4c   :  { %v463_v0 = vadd.f32 %v701_v60, %v462_v63 }
 0xe4e   :  { %v467_v3 = vsel %vm466_vm14, %v701_v60, %v463_v0 }
 0xe4f   :  { %v472_v6 = vsel %vm469_vm15, %v471_v4, %v467_v3 }
 0xe50   :  { %v475_v8 = vmul.f32 %v472_v6, %v425_v46 }
 0xead   :  { %v478_v5 = vpop.permute.xlu0 %477 }
 0xeae   :  { %v480_v7 = vmul.f32 %v478_v5, %v472_v6 }
 0xeb0   :  { %482 = vrot.lane.b32.xlu1 %v480_v7, %s740_s2 }
 0xf22   :  { %v483_v9 = vpop.permute.xlu1 %482 }
 0xf23   :  { %v485_v10 = vadd.f32 %v483_v9, %v475_v8 }
 0xf25   :  { %702 = vtanh.f32 %v485_v10 }
 0xf2b   :  { %v703_v11 = vpop.eup %702 }
 0xf2c   :  { %488 = vrot.lane.b32.xlu2 %v703_v11, %s740_s2 }
 0xf86   :  { %v489_v12 = vpop.permute.xlu2 %488 }
 0xf87   :  { %v491_v13 = vmul.f32 %v489_v12, %v472_v6 }
 0xf89   :  { %v494_v14 = vpack.c.bf16 %v491_v13, %v491_v13 }
 0xf8b   :  { %496 = vrot.lane.b32.xlu0 %v494_v14, %s741_s3 }
 0xffd   :  { %v497_v15 = vpop.permute.xlu0 %496 }
 0xffe   :  { %637 = vmatmul.msk.bf16.vlgmr.msra.gmra.mxu0 %vm77_vm2, %v497_v15 }
0x107b   :  { %v510_v17 = vpop.f32.mrf.mxu0 }
0x107c   :  { %v514_v18 = vadd.f32 %v510_v17, %v493_v16 }
0x107e   :  { %704 = vtanh.f32 %v514_v18  ;;  %v638_v21 = vmul.f32 -1.442695, %v514_v18 }
0x1080   :  { %706 = vpow2.f32 %v638_v21 }
0x1083   :  { %v512_v19 = vpop.f32.mrf.mxu0 }
0x1084   :  { %v705_v20 = vpop.eup %704 }
0x1085   :  { %537 = vrot.lane.b32.xlu1 %v705_v20, %s740_s2 }
0x1086   :  { %v707_v22 = vpop.eup %706 }
0x1087   :  { %v518_v23 = vadd.f32 1.0, %v707_v22 }
0x1089   :  { %708 = vrcp.f32 %v518_v23  ;;  %v530_v29 = vand.u32 2147483648, %v518_v23  ;;  %vm524_vm1 = vweird.f32 %v518_v23  ;;  %v528_v30 = vand.u32 2147483647, %v518_v23 }
0x108b   :  { %v531_v32 = vor.u32 1.1754944e-38, %v530_v29  ;;  %vm529_vm4 = vcmp.eq.f32.partialorder %v528_v30, 8.507059e+37 }
0x108f   :  { %v709_v24 = vpop.eup %708 }
0x1090   :  { %v520_v25 = vmul.f32 %v709_v24, %v518_v23  ;;  %vm525_vm0 = vweird.f32 %v709_v24 }
0x1091   :  { %vm526_vm3 = vmor %vm524_vm1, %vm525_vm0 }
0x1092   :  { %v521_v26 = vsub.f32 1.0, %v520_v25 }
0x1094   :  { %v522_v27 = vmul.f32 %v709_v24, %v521_v26 }
0x1096   :  { %v523_v28 = vadd.f32 %v709_v24, %v522_v27 }
0x1098   :  { %v527_v31 = vsel %vm526_vm3, %v709_v24, %v523_v28 }
0x1099   :  { %v532_v34 = vsel %vm529_vm4, %v531_v32, %v527_v31 }
0x109a   :  { %v535_v36 = vmul.f32 %v532_v34, %v485_v10 }
0x10f7   :  { %v538_v33 = vpop.permute.xlu1 %537 }
0x10f8   :  { %v540_v35 = vmul.f32 %v538_v33, %v532_v34 }
0x10fa   :  { %542 = vrot.lane.b32.xlu2 %v540_v35, %s740_s2 }
0x1154   :  { %v543_v37 = vpop.permute.xlu2 %542 }
0x1155   :  { %v545_v38 = vadd.f32 %v543_v37, %v535_v36 }
0x1157   :  { %710 = vtanh.f32 %v545_v38 }
0x115d   :  { %v711_v39 = vpop.eup %710 }
0x115e   :  { %548 = vrot.lane.b32.xlu0 %v711_v39, %s740_s2 }
0x11d0   :  { %v549_v44 = vpop.permute.xlu0 %548 }
0x11d1   :  { %v551_v45 = vmul.f32 %v549_v44, %v532_v34 }
0x11d3   :  { %712 = vtanh.f32 %v551_v45 }
0x11d9   :  { %v713_v46 = vpop.eup %712 }
0x11da   :  { %560 = vrot.lane.b32.xlu1 %v713_v46, %s741_s3 }
0x124c   :  { %v561_v47 = vpop.permute.xlu1 %560 }
0x124d   :  { %639 = vmatmul.msk.f32.vlgmr.msra.gmra.mxu1 %vm77_vm2, %v561_v47  ;;  %v589_v51 = vsel %vm77_vm2, %v561_v47, %v711_v39 }
0x12ca   :  { %v581_v49 = vpop.f32.mrf.mxu1 }
0x12cb   :  { %v582_v50 = vadd.f32 %v647_v48, %v581_v49 }
0x12cd   :  { %586 = vrot.lane.b32.xlu2 %v582_v50, %s741_s3 }
0x1327   :  { %v587_v52 = vpop.permute.xlu2 %586 }
0x1328   :  { %v591_v53 = vsel %vm590_vm5, %v589_v51, %v587_v52 }
0x1329   :  { %593 = vst.msk [vmem:[#allocation3] sm:$0x3] %vm592_vm6, %v591_v53 }
0x132a   :  { %604 = dma.vmem_to_hbm [thread:$0]  %s600_s14, 32, %s602_s17, [#allocation4]  }
0x132b   :  { %738 = dma.done.wait [#allocation4], 32  }
0x132c   :  { %739 = vsyncadd [#allocation4], 4294967264 }
0x132d   :  { %609 = vsyncpa [#allocation4], 1 }

</bundles_post_ra>
